<compile_context>
chip_gen: v7x
topology: tpu7x:2x2x1
jax: 0.10.0
libtpu: 0.0.40
codegen_flags: <defaults>
</compile_context>

<pallas_src>
import functools

import jax
import jax.numpy as jnp
from jax import lax
from jax.experimental import pallas as pl
from jax.experimental.pallas import tpu as pltpu

_LANES = 128
_SUBLANES = 8
# Largest padded exp cache (in rows) kept VMEM-resident for the single-read
# path: 32768 rows * 128 lanes * 4 B = 16 MiB, leaving headroom for the
# pipeline's input/output double buffers on every TPU generation.
_CACHE_MAX_ROWS = 32768


def _round_up(a, b):
    return ((a + b - 1) // b) * b


def _mask_last_rows(e, valid_rows):
    """Zero tile rows >= valid_rows (stale VMEM in a partial final tile)."""
    rid = lax.broadcasted_iota(jnp.int32, e.shape, 0)
    return jnp.where(rid < valid_rows, e, 0.0)


def _softmax_cached_kernel(x_ref, o_ref, ecache_ref, acc_ref, *,
                           num_tiles, last_rows, needs_mask):
    """Single-read path: pass 0 caches exp(x) tiles in VMEM, pass 1 normalizes."""
    p = pl.program_id(0)   # 0: exp + sum (fills VMEM cache), 1: normalize
    t = pl.program_id(1)   # tile index

    @pl.when(jnp.logical_and(p == 0, t == 0))
    def _():
        acc_ref[...] = jnp.zeros_like(acc_ref)

    @pl.when(p == 0)
    def _():
        e = jnp.exp(x_ref[...].astype(jnp.float32))

        def commit(ev):
            ecache_ref[t] = ev
            acc_ref[...] += jnp.sum(ev, axis=(0, 1), keepdims=True)

        if needs_mask:
            # Only the final (partial) tile pays for the row mask.
            @pl.when(t == num_tiles - 1)
            def _():
                commit(_mask_last_rows(e, last_rows))

            @pl.when(t != num_tiles - 1)
            def _():
                commit(e)
        else:
            commit(e)

    @pl.when(p == 1)
    def _():
        inv = 1.0 / acc_ref[...]                 # exact divide of (1,1) scalar
        o_ref[...] = ecache_ref[t] * inv


def _softmax_streamed_kernel(x_ref, o_ref, acc_ref, *,
                             num_tiles, last_rows, needs_mask):
    """Large-N path: pass 0 sums exp(x), pass 1 re-reads x and normalizes."""
    p = pl.program_id(0)
    t = pl.program_id(1)

    @pl.when(jnp.logical_and(p == 0, t == 0))
    def _():
        acc_ref[...] = jnp.zeros_like(acc_ref)

    e = jnp.exp(x_ref[...].astype(jnp.float32))

    @pl.when(p == 0)
    def _():
        def commit(ev):
            acc_ref[...] += jnp.sum(ev, axis=(0, 1), keepdims=True)

        if needs_mask:
            @pl.when(t == num_tiles - 1)
            def _():
                commit(_mask_last_rows(e, last_rows))

            @pl.when(t != num_tiles - 1)
            def _():
                commit(e)
        else:
            commit(e)

    @pl.when(p == 1)
    def _():
        # Rows past the array edge are clipped by the output writeback DMA,
        # so no mask is needed on the normalize pass.
        o_ref[...] = e * (1.0 / acc_ref[...])


def softmax(x, *, tile_rows=2048, cache_max_rows=_CACHE_MAX_ROWS):
    """Naive softmax of a 1-D vector computed with a fused Pallas TPU kernel."""
    n = x.shape[0]
    rows = _round_up(int(pl.cdiv(n, _LANES)), _SUBLANES)
    padded = rows * _LANES

    if padded == n:
        # Fast path: free reshape, no pad copy and no output slice below.
        x2 = x.reshape(rows, _LANES)
    else:
        # Pad only to (8,128) granularity; -inf makes exp() -> 0 for the tail.
        x2 = jnp.pad(x, (0, padded - n), constant_values=-jnp.inf)
        x2 = x2.reshape(rows, _LANES)

    tile_rows = int(max(_SUBLANES, _round_up(min(tile_rows, rows), _SUBLANES)))
    num_tiles = int(pl.cdiv(rows, tile_rows))
    last_rows = rows - (num_tiles - 1) * tile_rows
    needs_mask = last_rows != tile_rows          # partial final tile

    in_tile_bytes = tile_rows * _LANES * jnp.dtype(x2.dtype).itemsize
    out_tile_bytes = tile_rows * _LANES * 4
    use_cache = num_tiles * tile_rows <= cache_max_rows

    if use_cache:
        kernel = functools.partial(
            _softmax_cached_kernel, num_tiles=num_tiles,
            last_rows=last_rows, needs_mask=needs_mask)
        # Pass 1 never reads x: park the input index on the last block so no
        # extra input DMAs are issued during the normalize pass.
        in_spec = pl.BlockSpec(
            (tile_rows, _LANES),
            lambda p, t: (t + p * (num_tiles - 1 - t), 0))
        cache_bytes = num_tiles * tile_rows * _LANES * 4
        scratch = [pltpu.VMEM((num_tiles, tile_rows, _LANES), jnp.float32),
                   pltpu.VMEM((1, 1), jnp.float32)]
        vmem_limit = cache_bytes + 2 * in_tile_bytes + 2 * out_tile_bytes + (4 << 20)
    else:
        kernel = functools.partial(
            _softmax_streamed_kernel, num_tiles=num_tiles,
            last_rows=last_rows, needs_mask=needs_mask)
        in_spec = pl.BlockSpec((tile_rows, _LANES), lambda p, t: (t, 0))
        scratch = [pltpu.VMEM((1, 1), jnp.float32)]
        vmem_limit = 2 * in_tile_bytes + 2 * out_tile_bytes + (4 << 20)

    vmem_limit = int(max(vmem_limit, 16 << 20))

    out = pl.pallas_call(
        kernel,
        out_shape=jax.ShapeDtypeStruct((rows, _LANES), jnp.float32),
        grid_spec=pltpu.PrefetchScalarGridSpec(
            num_scalar_prefetch=0,
            grid=(2, num_tiles),
            in_specs=[in_spec],
            # Each output block is written exactly once, during pass p == 1.
            out_specs=pl.BlockSpec((tile_rows, _LANES), lambda p, t: (p * t, 0)),
            scratch_shapes=scratch),
        compiler_params=pltpu.CompilerParams(
            # Both grid axes carry state (sum accumulator + exp cache).
            dimension_semantics=("arbitrary", "arbitrary"),
            vmem_limit_bytes=vmem_limit),
    )(x2)

    out_flat = out.reshape(padded)
    return out_flat if padded == n else out_flat[:n]


if __name__ == "__main__":
    def ref_softmax(v):
        e = jnp.exp(v.astype(jnp.float32))
        return e / jnp.sum(e)

    # Small 1-D vector, matching the module's vector semantics.
    n = 8
    x = jax.random.normal(jax.random.PRNGKey(0), (n,), dtype=jnp.float32)
    y = softmax(x)
    jax.block_until_ready(y)
    assert y.shape == (n,) and y.dtype == jnp.float32
    assert jnp.allclose(y, ref_softmax(x), atol=1e-6, rtol=1e-5), (y, ref_softmax(x))

    # Tail-padded path (n not a multiple of 1024 -> -inf pad + output slice).
    n2 = 300
    x2 = jax.random.normal(jax.random.PRNGKey(1), (n2,), dtype=jnp.float32)
    y2 = softmax(x2)
    jax.block_until_ready(y2)
    assert jnp.allclose(y2, ref_softmax(x2), atol=1e-6, rtol=1e-5)

    # No-pad fast path + multi-tile cached path (shrunk tile for the test).
    n3 = 4096
    x3 = jax.random.normal(jax.random.PRNGKey(2), (n3,), dtype=jnp.float32)
    y3 = softmax(x3, tile_rows=8)
    jax.block_until_ready(y3)
    assert jnp.allclose(y3, ref_softmax(x3), atol=1e-6, rtol=1e-5)

    # Cached path with a partial final tile (exercises the gated row mask).
    n4 = 2500
    x4 = jax.random.normal(jax.random.PRNGKey(3), (n4,), dtype=jnp.float32)
    y4 = softmax(x4, tile_rows=16)
    jax.block_until_ready(y4)
    assert jnp.allclose(y4, ref_softmax(x4), atol=1e-6, rtol=1e-5)

    # Streamed (two HBM passes) path with a partial final tile.
    y5 = softmax(x4, tile_rows=16, cache_max_rows=0)
    jax.block_until_ready(y5)
    assert jnp.allclose(y5, ref_softmax(x4), atol=1e-6, rtol=1e-5)

    print("KERNEL_OK")
</pallas_src>

<mosaic_0001>
module attributes {stable_mosaic.version = 11 : i64} {
  func.func @_softmax_cached_kernel(%arg0: i32, %arg1: i32, %arg2: memref<8x128xf32, #tpu.memory_space<vmem>>, %arg3: memref<8x128xf32, #tpu.memory_space<vmem>>, %arg4: memref<1x8x128xf32, #tpu.memory_space<vmem>>, %arg5: memref<1x1xf32, #tpu.memory_space<vmem>>) attributes {dimension_semantics = [#tpu.dimension_semantics<arbitrary>, #tpu.dimension_semantics<arbitrary>], iteration_bounds = array<i64: 2, 1>, scalar_prefetch = 0 : i64, scratch_operands = 2 : i64, tpu.core_type = #tpu.core_type<tc>, window_params = [{transform_indices = @transform_0, window_bounds = array<i64: 8, 128>}, {transform_indices = @transform_1, window_bounds = array<i64: 8, 128>}]} {
    %c0_i32 = arith.constant 0 : i32
    %0 = arith.cmpi eq, %arg0, %c0_i32 : i32
    %c0_i32_0 = arith.constant 0 : i32
    %1 = arith.cmpi eq, %arg1, %c0_i32_0 : i32
    %2 = arith.andi %0, %1 : i1
    %3 = arith.extui %2 : i1 to i32
    %c0_i32_1 = arith.constant 0 : i32
    %4 = arith.cmpi ne, %3, %c0_i32_1 : i32
    scf.if %4 {
      %cst = arith.constant 0.000000e+00 : f32
      %11 = vector.broadcast %cst : f32 to vector<1x1xf32>
      %c0 = arith.constant 0 : index
      %c0_5 = arith.constant 0 : index
      %12 = vector.load %arg5[%c0, %c0_5] : memref<1x1xf32, #tpu.memory_space<vmem>>, vector<1x1xf32>
      tpu.vector_store %arg5[%c0, %c0_5], %11 {strides = array<i32>} : memref<1x1xf32, #tpu.memory_space<vmem>>, vector<1x1xf32>,
    } else {
    }
    %c0_i32_2 = arith.constant 0 : i32
    %5 = arith.cmpi eq, %arg0, %c0_i32_2 : i32
    %6 = arith.extui %5 : i1 to i32
    %c0_i32_3 = arith.constant 0 : i32
    %7 = arith.cmpi ne, %6, %c0_i32_3 : i32
    scf.if %7 {
      %c0 = arith.constant 0 : index
      %c0_5 = arith.constant 0 : index
      %11 = vector.load %arg2[%c0, %c0_5] : memref<8x128xf32, #tpu.memory_space<vmem>>, vector<8x128xf32>
      %12 = math.exp %11 : vector<8x128xf32>
      %13 = arith.index_cast %arg1 : i32 to index
      %c0_6 = arith.constant 0 : index
      %c0_7 = arith.constant 0 : index
      %14 = vector.load %arg4[%13, %c0_6, %c0_7] : memref<1x8x128xf32, #tpu.memory_space<vmem>>, vector<1x8x128xf32>
      %15 = vector.shape_cast %14 : vector<1x8x128xf32> to vector<8x128xf32>
      %16 = vector.shape_cast %12 : vector<8x128xf32> to vector<1x8x128xf32>
      tpu.vector_store %arg4[%13, %c0_6, %c0_7], %16 {strides = array<i32>} : memref<1x8x128xf32, #tpu.memory_space<vmem>>, vector<1x8x128xf32>,
      %c0_8 = arith.constant 0 : index
      %c0_9 = arith.constant 0 : index
      %17 = vector.load %arg5[%c0_8, %c0_9] : memref<1x1xf32, #tpu.memory_space<vmem>>, vector<1x1xf32>
      %18 = vector.shape_cast %12 : vector<8x128xf32> to vector<1x8x128xf32>
      %cst = arith.constant dense<0.000000e+00> : vector<1xf32>
      %19 = vector.multi_reduction <add>, %18, %cst [1, 2] : vector<1x8x128xf32> to vector<1xf32>
      %20 = vector.shape_cast %19 : vector<1xf32> to vector<1x1x1xf32>
      %21 = vector.extract %20[0, 0, 0] : f32 from vector<1x1x1xf32>
      %22 = vector.broadcast %21 : f32 to vector<1x1xf32>
      %23 = arith.addf %17, %22 : vector<1x1xf32>
      %c0_10 = arith.constant 0 : index
      %c0_11 = arith.constant 0 : index
      %24 = vector.load %arg5[%c0_10, %c0_11] : memref<1x1xf32, #tpu.memory_space<vmem>>, vector<1x1xf32>
      tpu.vector_store %arg5[%c0_10, %c0_11], %23 {strides = array<i32>} : memref<1x1xf32, #tpu.memory_space<vmem>>, vector<1x1xf32>,
    } else {
    }
    %c1_i32 = arith.constant 1 : i32
    %8 = arith.cmpi eq, %arg0, %c1_i32 : i32
    %9 = arith.extui %8 : i1 to i32
    %c0_i32_4 = arith.constant 0 : i32
    %10 = arith.cmpi ne, %9, %c0_i32_4 : i32
    scf.if %10 {
      %c0 = arith.constant 0 : index
      %c0_5 = arith.constant 0 : index
      %11 = vector.load %arg5[%c0, %c0_5] : memref<1x1xf32, #tpu.memory_space<vmem>>, vector<1x1xf32>
      %cst = arith.constant 1.000000e+00 : f32
      %12 = vector.broadcast %cst : f32 to vector<1x1xf32>
      %13 = arith.divf %12, %11 : vector<1x1xf32>
      %14 = arith.index_cast %arg1 : i32 to index
      %c0_6 = arith.constant 0 : index
      %c0_7 = arith.constant 0 : index
      %15 = vector.load %arg4[%14, %c0_6, %c0_7] : memref<1x8x128xf32, #tpu.memory_space<vmem>>, vector<1x8x128xf32>
      %16 = vector.shape_cast %15 : vector<1x8x128xf32> to vector<8x128xf32>
      %17 = vector.broadcast %13 : vector<1x1xf32> to vector<8x128xf32>
      %18 = arith.mulf %16, %17 : vector<8x128xf32>
      %c0_8 = arith.constant 0 : index
      %c0_9 = arith.constant 0 : index
      %19 = vector.load %arg3[%c0_8, %c0_9] : memref<8x128xf32, #tpu.memory_space<vmem>>, vector<8x128xf32>
      tpu.vector_store %arg3[%c0_8, %c0_9], %18 {strides = array<i32>} : memref<8x128xf32, #tpu.memory_space<vmem>>, vector<8x128xf32>,
    } else {
    }
    return
  }
  func.func @transform_0(%arg0: i32, %arg1: i32) -> (i32, i32) {
    %c0_i32 = arith.constant 0 : i32
    %0 = arith.subi %c0_i32, %arg1 : i32
    %1 = arith.muli %arg0, %0 : i32
    %2 = arith.addi %arg1, %1 : i32
    %c0_i32_0 = arith.constant 0 : i32
    %c0_i32_1 = arith.constant 0 : i32
    return %2, %c0_i32_0 : i32, i32
  }
  func.func @transform_1(%arg0: i32, %arg1: i32) -> (i32, i32) {
    %0 = arith.muli %arg0, %arg1 : i32
    %c0_i32 = arith.constant 0 : i32
    %c0_i32_0 = arith.constant 0 : i32
    return %0, %c0_i32 : i32, i32
  }
}

</mosaic_0001>

<bundles_post_ra>
// kernel: tpu_custom_call.1
= control target key start
LH: loop header
LB: loop body
LE: loop exit
PB: predicated region body
PF: predicated region fallthrough
CT: control target
= control target key end

     0   :  { %6 = vsyncpa [#allocation5], 0  ;;  %s570_s0 = inlined_call_operand.hbm [shape: f32[8,128], index: 0, kind: input, shape index: {}]   ;;  %s571_s1 = inlined_call_operand.hbm [shape: f32[8,128], index: 1, kind: output, shape index: {}]  }
   0x1   :  { %8 = vsyncpa [#allocation5 + $0x1], 0 }
   0x2   :  { %9 = vsyncpa [#allocation6], 0 }
   0x3   :  { %11 = vsyncpa [#allocation6 + $0x1], 0  ;;  %s481_s6 = smov 0   ;;  %s483_s7 = smov 0  }
   0x4   :  { %s485_s8 = smov 0  }
   0x5 LB: > { %s309_s9 = sadd.s32 4294967295, %s465_s8   ;;  %s310_s10 = sadd.s32 4294967294, %s465_s8   ;;  %s465_s8 = sphi %s485_s8, %s17_s8   ;;  %s461_s7 = sphi %s483_s7, %s577_s7   ;;  %s457_s6 = sphi %s481_s6, %s576_s6  }
   0x6   : > { %s29_s11 = sadd.s32 1, %s461_s7  ;;  %p342_p2 = scmp.lt.s32.totalorder %s465_s8, 2 }
   0x7   : > { %p31_p1 = scmp.ge.s32.totalorder %s29_s11, 2  ;;  %p343_p3 = scmp.eq.s32.totalorder %s465_s8, 0 }
   0x8   : > { %s467_s13 = smov [#allocation4]   ;;  %s381_s17 = scalar_lea.hbm %s570_s0, 128 }
   0x9   : > { %s579_s11 = smov (%p31_p1, %s29_s11), 0  ;;  %p504_p4 = pnand %p343_p3, %p342_p2 }
   0xa   : > { %s121_s14 = sshll.u32 %s467_s13, 4  ;;  %p382_p6 = scmp.ne.s32.totalorder %s570_s0, %s381_s17  ;;  %s122_s14 = int_to_ptr.vmem [resolvable:$true] %s121_s14 }
   0xb   : > { %p383_p7 = pneg %p504_p4  ;;  %p388_p10 = scmp.lt.u32.totalorder %s381_s17, %s570_s0 }
   0xd   : > { %p384_p8 = pnand %p383_p7, %p382_p6 }
   0xf   : > { %p385_p9 = pneg %p384_p8 }
  0x11   : > { %p390_p11 = pnand %p388_p10, %p385_p9 }
  0x13   : > { %393 = shalt.err (!%p390_p11)
}
  0x14   : > { %s394_s22 = scalar_lea.vmem %s122_s14, 128  ;;  %s401_s23 = scalar_lea.vmem %s122_s14, 256 }
  0x15   : > { %p395_p12 = scmp.ne.s32.totalorder %s122_s14, %s394_s22  ;;  %p402_p2 = scmp.lt.s32.totalorder %s122_s14, %s122_s14 }
  0x16   : > { %p403_p3 = scmp.lt.s32.totalorder %s401_s23, %s394_s22 }
  0x17   : > { %p397_p13 = pnand %p395_p12, %p383_p7 }
  0x18   : > { %p404_p0 = por %p403_p3, %p402_p2 }
  0x19   : > { %p398_p1 = pneg %p397_p13 }
  0x1b   : > { %p405_p5 = pnand %p404_p0, %p398_p1 }
  0x1d   : > { %408 = shalt.err (!%p405_p5)
}
  0x1e   : > { %337 = dma.hbm_to_vmem [thread:$0]  (!%p504_p4), %s570_s0, 128, %s122_s14, [#allocation5]  }
  0x1f   : > { %p126_p6 = scmp.lt.s32.totalorder %s465_s8, 3  ;;  %p573_p8 = scmp.ge.s32.totalorder %s465_s8, 1 }
  0x21   : > { %p127_p9 = pnand %p573_p8, %p126_p6 }
  0x22   : > { %p344_p7 = scmp.eq.s32.totalorder (!%p127_p9), %s309_s9, 0 }
  0x23   : > { %130 = sbr.rel (%p127_p9) target bundleno = 449 (0x1c1), region = 24 }
  0x2a   : > { %448 = dma.done.wait (%p344_p7), [#allocation5], 128  }
  0x2b   : > { %450 = vsyncadd (%p344_p7), [#allocation5], 4294967168  ;;  %p159_p0 = scmp.eq.s32.totalorder %s457_s6, 0 }
  0x2c   : > { %vm165_vm0 = vcmask (%p159_p0), 0   ;;  %v468_v0 = vmov (%p159_p0), 0.0  }
  0x2d   : > { %164 = sbr.rel (!%p159_p0) target bundleno = 52 (0x34), region = 32  ;;  %166 = vst.msk [vmem:[#allocation3] sm:$0x1] (%p159_p0), %vm165_vm0, %v468_v0 }
  0x34 PF: > { %p317_p5 = scmp.ne.s32.totalorder %s457_s6, 0 }
  0x35   : > { %v170_v1 = vld [vmem:[#allocation4] sm:$0xff] (!%p317_p5)  ;;  %v176_v11 = vld [vmem:[#allocation3] sm:$0x1] (!%p317_p5)  ;;  %vm188_vm1 = vcmask (!%p317_p5), 0  }
  0x36   : > { %169 = sbr.rel (%p317_p5) target bundleno = 275 (0x113), region = 36  ;;  %v171_v2 = vmul.f32 (!%p317_p5), 1.442695, %v170_v1 }
  0x38   : > { %376 = vpow2.f32 (!%p317_p5), %v171_v2 }
  0x42   : > { %v377_v3 = vpop.eup %376 }
  0x43   : > { %175 = vst [vmem:[#allocation2] sm:$0xff] %v377_v3  ;;  %177 = vadd.xlane.f32.xlu0 %v377_v3 }
  0xd0   : > { %v178_v4 = vpop.xlane.xlu0 %177 }
  0xd1   : > { %v179_v5 = vrot.slane %v178_v4, 4 }
  0xd3   : > { %v180_v6 = vadd.f32 %v179_v5, %v178_v4 }
  0xd5   : > { %v181_v7 = vrot.slane %v180_v6, 2 }
  0xd7   : > { %v182_v8 = vadd.f32 %v181_v7, %v180_v6 }
  0xd9   : > { %v183_v9 = vrot.slane %v182_v8, 1 }
  0xdb   : > { %v184_v10 = vadd.f32 %v183_v9, %v182_v8 }
  0xdd   : > { %324 = vpush %v184_v10 }
 0x10e   : > { %s325_s26 = spop %324 }
 0x10f   : > { %v186_v12 = vstv %s325_s26 }
 0x110   : > { %v187_v13 = vadd.f32 %v186_v12, %v176_v11 }
 0x112   : > { %189 = vst.msk [vmem:[#allocation3] sm:$0x1] %vm188_vm1, %v187_v13 }
 0x113 PF: > { %p318_p4 = scmp.ne.s32.totalorder %s457_s6, 1 }
 0x114   : > { %v201_v15 = vlaneseq (!%p318_p4)  ;;  %v469_v16 = vmov (!%p318_p4), 0   ;;  %v199_v21 = vld [vmem:[#allocation2] sm:$0xff] (!%p318_p4) }
 0x115   : > { %193 = sbr.rel (%p318_p4) target bundleno = 426 (0x1aa), region = 40  ;;  %378 = vset.pattern.permute.xlu0 (!%p318_p4), %v469_v16 }
 0x116   : > { %v202_v17 = vshrl.u32 (!%p318_p4), %v201_v15, 7 }
 0x118   : > { %v203_v18 = vsub.s32 (!%p318_p4), 0, %v202_v17 }
 0x119   : > { %v194_v14 = vld [vmem:[#allocation3] sm:$0x1] (!%p318_p4) }
 0x11a   : > { %379 = vrcp.f32 (!%p318_p4), %v194_v14 }
 0x124   : > { %v380_v19 = vpop.eup %379 }
 0x125   : > { %v204_v20 = vrot.slane %v380_v19, %v203_v18 }
 0x127   : > { %206 = vperm.xlu0 %378, %v204_v20  }
 0x1a6   : > { %v207_v22 = vpop.permute.xlu0 %206 }
 0x1a7   : > { %v209_v23 = vmul.f32 %v207_v22, %v199_v21 }
 0x1a9   : > { %210 = vst [vmem:[#allocation7] sm:$0xff] %v209_v23 }
 0x1aa PF: > { %p535_p10 = scmp.eq.s32.totalorder %s309_s9, 1  ;;  %s470_s28 = smov [#allocation7]  }
 0x1ab   : > { %s226_s29 = sshll.u32 %s470_s28, 4  ;;  %s227_s29 = int_to_ptr.vmem [resolvable:$true] %s226_s29 }
 0x1ac   : > { %s409_s30 = scalar_lea.vmem %s227_s29, 128  ;;  %s415_s2 = scalar_lea.vmem %s227_s29, 256 }
 0x1ad   : > { %p410_p11 = scmp.ne.s32.totalorder %s227_s29, %s409_s30  ;;  %p416_p1 = scmp.lt.s32.totalorder %s227_s29, %s227_s29 }
 0x1ae   : > { %p417_p2 = scmp.lt.s32.totalorder %s415_s2, %s409_s30 }
 0x1af   : > { %p411_p12 = pnand %p410_p11, %p535_p10 }
 0x1b0   : > { %p418_p3 = por %p417_p2, %p416_p1 }
 0x1b1   : > { %p412_p13 = pneg %p411_p12 }
 0x1b3   : > { %p419_p6 = pnand %p418_p3, %p412_p13 }
 0x1b5   : > { %422 = shalt.err (!%p419_p6)
}
 0x1b6   : > { %s423_s5 = scalar_lea.hbm %s571_s1, 128 }
 0x1b7   : > { %p424_p8 = scmp.ne.s32.totalorder %s571_s1, %s423_s5  ;;  %p429_p0 = scmp.lt.u32.totalorder %s423_s5, %s571_s1 }
 0x1b9   : > { %p425_p9 = pnand %p424_p8, %p535_p10 }
 0x1bb   : > { %p426_p7 = pneg %p425_p9 }
 0x1bd   : > { %p431_p5 = pnand %p429_p0, %p426_p7 }
 0x1bf   : > { %434 = shalt.err (!%p431_p5)
}
 0x1c0   : > { %331 = dma.vmem_to_hbm [thread:$0]  (%p535_p10), %s227_s29, 128, %s571_s1, [#allocation6]  }
 0x1c1 PF: > { %p347_p4 = scmp.eq.s32.totalorder %s310_s10, 1  ;;  %p575_p11 = scmp.ge.s32.totalorder %s465_s8, 2 }
 0x1c3   : > { %p339_p12 = pnand %p347_p4, %p575_p11 }
 0x1c5   : > { %452 = dma.done.wait (!%p339_p12), [#allocation6], 128  }
 0x1c6   : > { %454 = vsyncadd (!%p339_p12), [#allocation6], 4294967168  ;;  %s17_s8 = sadd.s32 1, %s465_s8   ;;  %s576_s6 = smov %s461_s7 }
 0x1c7   : > { %p14_p13 = scmp.ge.s32.totalorder %s17_s8, 4   ;;  %s577_s7 = smov %s579_s11 }
 0x1c9   :  { %16 = sbr.rel (!%p14_p13) target bundleno = 5 (0x5), region = 83 }
 0x1d0   :  { %244 = vsyncpa [#allocation5], 1 }
 0x1d1   :  { %246 = vsyncpa [#allocation5 + $0x1], 1 }
 0x1d2   :  { %247 = vsyncpa [#allocation6], 1 }
 0x1d3   :  { %249 = vsyncpa [#allocation6 + $0x1], 1 }

</bundles_post_ra>
